<compile_context>
chip_gen: v7x
topology: tpu7x:2x2x1
jax: 0.10.0
libtpu: 0.0.40
codegen_flags: <defaults>
</compile_context>

<pallas_src>
import functools

import jax
import jax.numpy as jnp
from jax.experimental import pallas as pl
from jax.experimental.pallas import tpu as pltpu

LANE = 128


def _round_up(x, m):
    return (x + m - 1) // m * m


def _vmem_limit_bytes(tile, n_feature, n_hidden):
    """Honest VMEM footprint estimate (+2 MiB margin, 4 MiB floor)."""
    sub = lambda v: _round_up(max(v, 1), 8)
    lane = lambda v: _round_up(max(v, 1), LANE)
    # double-buffered x / out lane blocks (sublane-padded)
    blocks = 2 * 4 * (sub(n_feature) + sub(1)) * tile
    # resident aux pack + W2 (lane-padded), conservatively x2 buffers
    weights = 2 * 4 * sub(n_hidden) * (lane(n_feature + 3) + lane(n_hidden))
    # live f32 hidden activations [H, tile]
    acts = 3 * 4 * sub(n_hidden) * tile
    return int(min(max(blocks + weights + acts + (2 << 20), 4 << 20), 64 << 20))


def mlp_kernel(x_ref, aux_ref, w2_ref, b3_ref, o_ref, *, n_feature):
    """One lane-dense (1, tile_n) column block of the fused MLP.

    Transposed layout: batch on the 128-lane axis, features/hidden on sublanes.
      x_ref   : [F, tile_n]  activations (blocked along lanes)
      aux_ref : [H, F+3]     columns = [W1 | b1 | b2 | W3.T]   (VMEM-resident)
      w2_ref  : [H, H]       torch-layout W2 (out, in)         (VMEM-resident)
      b3_ref  : [1, 1]       b3 scalar (SMEM)
      o_ref   : [1, tile_n]  lane-dense output row
    """
    f = n_feature
    x = x_ref[...]                              # [F, tile_n]
    w1 = aux_ref[:, 0:f]                        # [H, F]
    b1 = aux_ref[:, f:f + 1]                    # [H, 1]
    b2 = aux_ref[:, f + 1:f + 2]                # [H, 1]
    w3 = aux_ref[:, f + 2:f + 3]                # [H, 1]  (= W3[0, :].T)

    # ---- layer 1: relu(W1 @ x + b1) ----
    if f == 1:
        # K=1 matmul wastes the MXU: outer product on the VPU instead.
        h = w1 * x + b1                         # [H,1] * [1,tile_n] -> [H,tile_n]
    else:
        h = jnp.dot(w1, x, preferred_element_type=jnp.float32) + b1
    h = jnp.maximum(h, 0.0)

    # ---- layer 2: relu(W2 @ h + b2) ---- square HxH matmul on the MXU;
    # the MXU result dimension is tile_n (lane-dense), not H.
    h = jnp.dot(w2_ref[...], h, preferred_element_type=jnp.float32) + b2
    h = jnp.maximum(h, 0.0)

    # ---- layer 3 (n_output == 1): W3 @ h + b3 as an XLU sublane reduce ----
    out = jnp.sum(h * w3, axis=0, keepdims=True) + b3_ref[0, 0]   # [1, tile_n]
    o_ref[...] = out.astype(o_ref.dtype)


def net_forward(x, packed, *, n_feature, n_hidden, n_output, tile_n=8192):
    """Run the fused MLP kernel. x: [N, n_feature] float32 -> [N, n_output]."""
    if n_output != 1:
        # TODO(synk): general n_output needs an [O,H] @ [H,tile_n] MXU layer-3 path.
        raise NotImplementedError("kernel is specialized to n_output == 1")
    aux, w2, b3 = packed
    n = x.shape[0]

    # Batch on the lane axis: x -> [F, N] so x / output blocks are lane-dense.
    xt = x.T

    n_lanes = _round_up(n, LANE)
    tile = min(_round_up(tile_n, LANE), n_lanes)
    # For large problems, guarantee grid >= 2 so the "parallel" lane axis can
    # shard across both v7x TensorCores; tiny N stays a single grid step
    # (splitting below ~4K rows just adds fixed per-kernel overhead).
    if n_lanes >= 4096 and tile >= n_lanes:
        tile = _round_up(pl.cdiv(n_lanes, 2), LANE)
    n_pad = _round_up(n, tile)
    if n_pad != n:
        xt = jnp.pad(xt, ((0, 0), (0, n_pad - n)))
    grid = (n_pad // tile,)

    kernel = functools.partial(mlp_kernel, n_feature=n_feature)

    flops = 2 * n_pad * (n_feature * n_hidden + n_hidden * n_hidden
                         + n_hidden * n_output)
    bytes_accessed = 4 * (xt.size + aux.size + w2.size + b3.size
                          + n_pad * n_output)

    out_row = pl.pallas_call(
        kernel,
        out_shape=jax.ShapeDtypeStruct((1, n_pad), jnp.float32),
        grid=grid,
        in_specs=[
            # Lane-blocked activations (pipelined HBM->VMEM per grid step).
            pl.BlockSpec((n_feature, tile), lambda i: (0, i)),
            # Packed [W1|b1|b2|W3.T] and W2: constant index_map -> VMEM-resident.
            pl.BlockSpec(aux.shape, lambda i: (0, 0)),
            pl.BlockSpec(w2.shape, lambda i: (0, 0)),
            # b3 scalar lives in SMEM.
            pl.BlockSpec(memory_space=pltpu.MemorySpace.SMEM),
        ],
        out_specs=pl.BlockSpec((1, tile), lambda i: (0, i)),
        compiler_params=pltpu.CompilerParams(
            # Shard the lane/batch axis across both TensorCores on v7x.
            dimension_semantics=("parallel",),
            vmem_limit_bytes=_vmem_limit_bytes(tile, n_feature, n_hidden),
        ),
        cost_estimate=pl.CostEstimate(
            flops=flops, transcendentals=0, bytes_accessed=bytes_accessed),
    )(xt, aux, w2, b3)

    return out_row[:, :n].T   # back to [N, 1]


def init_params(key, n_feature, n_hidden, n_output):
    """PyTorch-style (uniform +-1/sqrt(fan_in)) init, torch weight layout [out, in]."""
    keys = jax.random.split(key, 6)

    def linear(kw, kb, fan_in, fan_out):
        bound = 1.0 / jnp.sqrt(jnp.float32(fan_in))
        w = jax.random.uniform(kw, (fan_out, fan_in), jnp.float32, -bound, bound)
        b = jax.random.uniform(kb, (fan_out,), jnp.float32, -bound, bound)
        return w, b

    w1, b1 = linear(keys[0], keys[1], n_feature, n_hidden)
    w2, b2 = linear(keys[2], keys[3], n_hidden, n_hidden)
    w3, b3 = linear(keys[4], keys[5], n_hidden, n_output)
    return (w1, b1, w2, b2, w3, b3)


def pack_params(params):
    """Pack for the transposed kernel: aux = [W1|b1|b2|W3.T], W2, b3 scalar."""
    w1, b1, w2, b2, w3, b3 = params
    aux = jnp.concatenate([w1, b1[:, None], b2[:, None], w3.T], axis=1)  # [H, F+3]
    b3_arr = b3.reshape(1, 1).astype(jnp.float32)                        # [1, 1]
    return aux, w2, b3_arr


def net_forward_ref(x, params):
    """Pure-JAX reference (torch semantics) for correctness checking."""
    w1, b1, w2, b2, w3, b3 = params
    h = jnp.maximum(x @ w1.T + b1, 0.0)
    h = jnp.maximum(h @ w2.T + b2, 0.0)
    return h @ w3.T + b3


if __name__ == "__main__":
    # Shapes implied by the module's script: x = linspace(-1, 1, 50)[:, None]
    # => n_feature = 1, n_output = 1; pick n_hidden = 32.
    n_feature, n_hidden, n_output = 1, 32, 1

    key = jax.random.PRNGKey(0)
    params = init_params(key, n_feature, n_hidden, n_output)
    packed = pack_params(params)

    # Deterministic input matching the PyTorch script.
    x = jnp.linspace(-1.0, 1.0, 50, dtype=jnp.float32).reshape(50, 1)

    out = net_forward(x, packed, n_feature=n_feature, n_hidden=n_hidden,
                      n_output=n_output)
    out = jax.block_until_ready(out)

    ref = net_forward_ref(x, params)
    assert out.shape == (50, n_output), out.shape
    assert jnp.allclose(out, ref, atol=1e-5, rtol=1e-5), "mismatch vs reference"

    print("KERNEL_OK")
</pallas_src>

<mosaic_0001>
module attributes {stable_mosaic.version = 11 : i64} {
  func.func @mlp_kernel(%arg0: i32, %arg1: memref<1x128xf32, #tpu.memory_space<vmem>>, %arg2: memref<32x4xf32, #tpu.memory_space<vmem>>, %arg3: memref<32x32xf32, #tpu.memory_space<vmem>>, %arg4: memref<1x1xf32, #tpu.memory_space<smem>>, %arg5: memref<1x128xf32, #tpu.memory_space<vmem>>) attributes {dimension_semantics = [#tpu.dimension_semantics<parallel>], iteration_bounds = array<i64: 1>, scalar_prefetch = 0 : i64, scratch_operands = 0 : i64, tpu.core_type = #tpu.core_type<tc>, window_params = [{transform_indices = @transform_0, window_bounds = array<i64: 1, 128>}, {pipeline_mode = #tpu.pipeline_mode<synchronous>, transform_indices = @transform_1, window_bounds = array<i64: 32, 4>}, {pipeline_mode = #tpu.pipeline_mode<synchronous>, transform_indices = @transform_2, window_bounds = array<i64: 32, 32>}, {transform_indices = @transform_3, window_bounds = array<i64: 1, 1>}, {transform_indices = @transform_4, window_bounds = array<i64: 1, 128>}]} {
    %c0 = arith.constant 0 : index
    %c0_0 = arith.constant 0 : index
    %0 = vector.load %arg1[%c0, %c0_0] : memref<1x128xf32, #tpu.memory_space<vmem>>, vector<1x128xf32>
    %c0_1 = arith.constant 0 : index
    %c0_2 = arith.constant 0 : index
    %1 = vector.load %arg2[%c0_1, %c0_2] : memref<32x4xf32, #tpu.memory_space<vmem>>, vector<32x1xf32>
    %c0_3 = arith.constant 0 : index
    %c1 = arith.constant 1 : index
    %2 = vector.load %arg2[%c0_3, %c1] : memref<32x4xf32, #tpu.memory_space<vmem>>, vector<32x1xf32>
    %c0_4 = arith.constant 0 : index
    %c2 = arith.constant 2 : index
    %3 = vector.load %arg2[%c0_4, %c2] : memref<32x4xf32, #tpu.memory_space<vmem>>, vector<32x1xf32>
    %c0_5 = arith.constant 0 : index
    %c3 = arith.constant 3 : index
    %4 = vector.load %arg2[%c0_5, %c3] : memref<32x4xf32, #tpu.memory_space<vmem>>, vector<32x1xf32>
    %5 = vector.broadcast %1 : vector<32x1xf32> to vector<32x128xf32>
    %6 = vector.broadcast %0 : vector<1x128xf32> to vector<32x128xf32>
    %7 = arith.mulf %5, %6 : vector<32x128xf32>
    %8 = vector.broadcast %2 : vector<32x1xf32> to vector<32x128xf32>
    %9 = arith.addf %7, %8 : vector<32x128xf32>
    %cst = arith.constant 0.000000e+00 : f32
    %10 = vector.broadcast %cst : f32 to vector<32x128xf32>
    %11 = arith.maximumf %9, %10 : vector<32x128xf32>
    %c0_6 = arith.constant 0 : index
    %c0_7 = arith.constant 0 : index
    %12 = vector.load %arg3[%c0_6, %c0_7] : memref<32x32xf32, #tpu.memory_space<vmem>>, vector<32x32xf32>
    %cst_8 = arith.constant dense<0.000000e+00> : vector<32x128xf32>
    %13 = tpu.matmul %12, %11, %cst_8 {dimension_numbers = #tpu.dot_dimension_numbers<[1], [0], [0], [1], [0, 0, 1, 1], [], []>} : vector<32x32xf32>, vector<32x128xf32>, vector<32x128xf32> -> vector<32x128xf32>
    %14 = vector.broadcast %3 : vector<32x1xf32> to vector<32x128xf32>
    %15 = arith.addf %13, %14 : vector<32x128xf32>
    %cst_9 = arith.constant 0.000000e+00 : f32
    %16 = vector.broadcast %cst_9 : f32 to vector<32x128xf32>
    %17 = arith.maximumf %15, %16 : vector<32x128xf32>
    %18 = vector.broadcast %4 : vector<32x1xf32> to vector<32x128xf32>
    %19 = arith.mulf %17, %18 : vector<32x128xf32>
    %cst_10 = arith.constant dense<0.000000e+00> : vector<128xf32>
    %20 = vector.multi_reduction <add>, %19, %cst_10 [0] : vector<32x128xf32> to vector<128xf32>
    %21 = vector.shape_cast %20 : vector<128xf32> to vector<1x128xf32>
    %c0_11 = arith.constant 0 : index
    %c0_12 = arith.constant 0 : index
    %22 = memref.load %arg4[%c0_11, %c0_12] : memref<1x1xf32, #tpu.memory_space<smem>>
    %23 = vector.broadcast %22 : f32 to vector<1x128xf32>
    %24 = arith.addf %21, %23 : vector<1x128xf32>
    %c0_13 = arith.constant 0 : index
    %c0_14 = arith.constant 0 : index
    %25 = vector.load %arg5[%c0_13, %c0_14] : memref<1x128xf32, #tpu.memory_space<vmem>>, vector<1x128xf32>
    tpu.vector_store %arg5[%c0_13, %c0_14], %24 {strides = array<i32>} : memref<1x128xf32, #tpu.memory_space<vmem>>, vector<1x128xf32>,
    return
  }
  func.func @transform_0(%arg0: i32) -> (i32, i32) {
    %c0_i32 = arith.constant 0 : i32
    %c0_i32_0 = arith.constant 0 : i32
    return %c0_i32, %arg0 : i32, i32
  }
  func.func @transform_1(%arg0: i32) -> (i32, i32) {
    %c0_i32 = arith.constant 0 : i32
    %c0_i32_0 = arith.constant 0 : i32
    %c0_i32_1 = arith.constant 0 : i32
    return %c0_i32, %c0_i32_0 : i32, i32
  }
  func.func @transform_2(%arg0: i32) -> (i32, i32) {
    %c0_i32 = arith.constant 0 : i32
    %c0_i32_0 = arith.constant 0 : i32
    %c0_i32_1 = arith.constant 0 : i32
    return %c0_i32, %c0_i32_0 : i32, i32
  }
  func.func @transform_3(%arg0: i32) -> (i32, i32) {
    %c0_i32 = arith.constant 0 : i32
    %c0_i32_0 = arith.constant 0 : i32
    %c0_i32_1 = arith.constant 0 : i32
    return %c0_i32, %c0_i32_0 : i32, i32
  }
  func.func @transform_4(%arg0: i32) -> (i32, i32) {
    %c0_i32 = arith.constant 0 : i32
    %c0_i32_0 = arith.constant 0 : i32
    return %c0_i32, %arg0 : i32, i32
  }
}

</mosaic_0001>

<bundles_post_ra>
// kernel: tpu_custom_call.1
= control target key start
LH: loop header
LB: loop body
LE: loop exit
PB: predicated region body
PF: predicated region fallthrough
CT: control target
= control target key end

     0   :  { %v324_v1 = vmov 1   ;;  %v325_v2 = vmov 0   ;;  %s400_s0 = inlined_call_operand.vmem [shape: f32[1,128], index: 0, kind: input, shape index: {}]   ;;  %s401_s1 = inlined_call_operand.vmem [shape: f32[32,4], index: 1, kind: input, shape index: {}]   ;;  %s402_s2 = inlined_call_operand.vmem [shape: f32[32,32], index: 2, kind: input, shape index: {}]   ;;  %s403_s3 = inlined_call_operand.<no memory space> [shape: f32[1,1], index: 3, kind: input, shape index: {}]   ;;  %s404_s4 = inlined_call_operand.hbm [shape: f32[1,128], index: 4, kind: output, shape index: {}]  }
   0x1   :  { %v20_v0 = vld [vmem:[%s401_s1] sm:$0xff]  ;;  %292 = vset.pattern.permute.xlu1 %v324_v1  ;;  %291 = vset.pattern.permute.xlu0 %v325_v2 }
   0x2   :  { %10 = vsyncpa [#allocation4], 0  ;;  %55 = vperm.xlu1 %292, %v20_v0   ;;  %26 = vperm.xlu0 %291, %v20_v0   ;;  %v21_v3 = vld [vmem:[%s401_s1 + $0x8] sm:$0xff]  ;;  %v22_v4 = vld [vmem:[%s401_s1 + $0x10] sm:$0xff]  ;;  %vm98_vm0 = vcmask 261120   ;;  %v326_v8 = vmov 2  }
   0x3   :  { %v23_v5 = vld [vmem:[%s401_s1 + $0x18] sm:$0xff]  ;;  %v78_v6 = vld [vmem:[%s402_s2] sm:$0xff]  ;;  %v80_v7 = vld [vmem:[%s402_s2 + $0x10] sm:$0xff]  ;;  %v327_v9 = vmov 3   ;;  %s328_s6 = smov [#allocation3]  }
   0x4   :  { %268 = vmatprep.mubr.msk.f32.mxu0 %vm98_vm0, %v78_v6  ;;  %271 = vmatprep.mubr.msk.f32.mxu1 %vm98_vm0, %v80_v7  ;;  %v247_v10 = vld [vmem:[%s400_s0] ss:$0 sm:$0xff]  ;;  %v79_v33 = vld [vmem:[%s402_s2 + $0x8] sm:$0xff]  ;;  %v81_v34 = vld [vmem:[%s402_s2 + $0x18] sm:$0xff]  ;;  %s239_s7 = sshll.u32 %s328_s6, 4  ;;  %s240_s7 = int_to_ptr.vmem [resolvable:$true] %s239_s7 }
   0x5   :  { %s300_s8 = scalar_lea.vmem %s240_s7, 16  ;;  %s304_s9 = scalar_lea.vmem %s240_s7, 32 }
   0x6   :  { %59 = vperm.xlu1 %292, %v21_v3   ;;  %31 = vperm.xlu0 %291, %v21_v3   ;;  %p301_p0 = scmp.ne.s32.totalorder %s240_s7, %s300_s8  ;;  %p305_p1 = scmp.lt.s32.totalorder %s240_s7, %s240_s7 }
   0x7   :  { %p306_p2 = scmp.lt.s32.totalorder %s304_s9, %s300_s8 }
   0x9   :  { %p307_p3 = por %p306_p2, %p305_p1 }
   0xa   :  { %293 = vset.pattern.permute.xlu1 %v325_v2  ;;  %36 = vperm.xlu0 %291, %v22_v4  }
   0xb   :  { %41 = vperm.xlu1 %293, %v23_v5   ;;  %p308_p4 = pnand %p307_p3, %p301_p0 }
   0xe   :  { %294 = vset.pattern.permute.xlu0 %v324_v1 }
   0xf   :  { %295 = vset.pattern.permute.xlu1 %v324_v1  ;;  %63 = vperm.xlu0 %294, %v22_v4  }
  0x10   :  { %67 = vperm.xlu1 %295, %v23_v5  }
  0x13   :  { %297 = vset.pattern.permute.xlu0 %v326_v8 }
  0x14   :  { %296 = vset.pattern.permute.xlu1 %v326_v8  ;;  %87 = vperm.xlu0 %297, %v21_v3  }
  0x15   :  { %83 = vperm.xlu1 %296, %v20_v0  }
  0x18   :  { %298 = vset.pattern.permute.xlu0 %v327_v9 }
  0x19   :  { %91 = vperm.xlu1 %296, %v22_v4   ;;  %201 = vperm.xlu0 %298, %v20_v0  }
  0x1d   :  { %95 = vperm.xlu1 %296, %v23_v5   ;;  %213 = vperm.xlu0 %298, %v23_v5  }
  0x21   :  { %299 = vset.pattern.permute.xlu1 %v327_v9 }
  0x22   :  { %205 = vperm.xlu1 %299, %v21_v3   ;;  %v230_v3 = vstv %s403_s3 }
  0x26   :  { %209 = vperm.xlu1 %299, %v22_v4  }
  0x81   :  { %v56_v11 = vpop.permute.xlu1 %55  ;;  %v27_v12 = vpop.permute.xlu0 %26 }
  0x82   :  { %v50_v13 = vmul.f32 %v247_v10, %v27_v12 }
  0x84   :  { %v70_v16 = vadd.f32 %v56_v11, %v50_v13 }
  0x85   :  { %v60_v14 = vpop.permute.xlu1 %59  ;;  %v32_v15 = vpop.permute.xlu0 %31 }
  0x86   :  { %v51_v17 = vmul.f32 %v247_v10, %v32_v15  ;;  %v74_v20 = vmax.f32 %v70_v16, 0.0 }
  0x88   :  { %v71_v18 = vadd.f32 %v60_v14, %v51_v17 }
  0x89   :  { %v37_v19 = vpop.permute.xlu0 %36 }
  0x8a   :  { %v75_v21 = vmax.f32 %v71_v18, 0.0  ;;  %v42_v22 = vpop.permute.xlu1 %41  ;;  %v52_v24 = vmul.f32 %v247_v10, %v37_v19 }
  0x8b   :  { %v53_v25 = vmul.f32 %v247_v10, %v42_v22 }
  0x8c   :  { %v274_v23 = vpack.c.bf16 %v75_v21, %v74_v20 }
  0x8e   :  { %v64_v26 = vpop.permute.xlu0 %63  ;;  %275 = vmatprep.subr.bf16.mxu0 %v274_v23  ;;  %282 = vmatprep.subr.bf16.mxu1 %v274_v23 }
  0x8f   :  { %v72_v27 = vadd.f32 %v64_v26, %v52_v24  ;;  %v68_v28 = vpop.permute.xlu1 %67  ;;  %277 = vmatpush3.bf16.msra.mxu0 %v274_v23  ;;  %284 = vmatpush3.bf16.msra.mxu1 %v274_v23 }
  0x90   :  { %v73_v29 = vadd.f32 %v68_v28, %v53_v25 }
  0x91   :  { %v76_v30 = vmax.f32 %v72_v27, 0.0 }
  0x92   :  { %v77_v31 = vmax.f32 %v73_v29, 0.0 }
  0x93   :  { %v88_v37 = vpop.permute.xlu0 %87 }
  0x94   :  { %v278_v32 = vpack.c.bf16 %v77_v31, %v76_v30  ;;  %v84_v35 = vpop.permute.xlu1 %83 }
  0x96   :  { %279 = vmatprep.subr.bf16.mxu0 %v278_v32  ;;  %283 = vmatprep.subr.bf16.mxu1 %v278_v32 }
  0x97   :  { %281 = vmatpush3.bf16.msra.mxu0 %v278_v32  ;;  %285 = vmatpush3.bf16.msra.mxu1 %v278_v32 }
  0x98   :  { %v92_v36 = vpop.permute.xlu1 %91  ;;  %v202_v40 = vpop.permute.xlu0 %201 }
  0x9a   :  { %269 = vmatmul.mubr.msk.f32.vlgmr.msra.gmra.mrb[0].mxu0 %vm98_vm0, %v79_v33  ;;  %272 = vmatmul.mubr.msk.f32.vlgmr.msra.gmra.mrb[0].mxu1 %vm98_vm0, %v81_v34 }
  0x9c   :  { %v96_v38 = vpop.permute.xlu1 %95  ;;  %v214_v56 = vpop.permute.xlu0 %213 }
  0xa1   :  { %v206_v39 = vpop.permute.xlu1 %205 }
  0xa5   :  { %v210_v55 = vpop.permute.xlu1 %209 }
 0x16d   :  { %v270_v41 = vpop.f32.mrb[0].mxu0  ;;  %v273_v42 = vpop.f32.mrb[0].mxu1 }
 0x16e   :  { %v183_v43 = vadd.f32 %v270_v41, %v88_v37  ;;  %v177_v44 = vpop.f32.mrb[1].mxu0  ;;  %v187_v45 = vpop.f32.mrb[1].mxu1  ;;  %v193_v46 = vadd.f32 %v273_v42, %v96_v38 }
 0x16f   :  { %v178_v47 = vadd.f32 %v177_v44, %v84_v35  ;;  %v188_v48 = vadd.f32 %v187_v45, %v92_v36 }
 0x170   :  { %v197_v49 = vmax.f32 %v183_v43, 0.0  ;;  %v199_v53 = vmax.f32 %v193_v46, 0.0 }
 0x171   :  { %v196_v50 = vmax.f32 %v178_v47, 0.0  ;;  %v198_v51 = vmax.f32 %v188_v48, 0.0 }
 0x172   :  { %v217_v52 = vmul.f32 %v206_v39, %v197_v49  ;;  %v219_v60 = vmul.f32 %v214_v56, %v199_v53 }
 0x173   :  { %v216_v54 = vmul.f32 %v202_v40, %v196_v50  ;;  %v218_v57 = vmul.f32 %v210_v55, %v198_v51 }
 0x175   :  { %v220_v58 = vadd.f32 %v217_v52, %v216_v54 }
 0x177   :  { %v221_v59 = vadd.f32 %v220_v58, %v218_v57 }
 0x179   :  { %v222_v61 = vadd.f32 %v221_v59, %v219_v60 }
 0x17b   :  { %v223_v62 = vrot.slane %v222_v61, 4 }
 0x17d   :  { %v224_v63 = vadd.f32 %v223_v62, %v222_v61 }
 0x17f   :  { %v225_v0 = vrot.slane %v224_v63, 2 }
 0x181   :  { %v226_v1 = vadd.f32 %v225_v0, %v224_v63 }
 0x183   :  { %v227_v2 = vrot.slane %v226_v1, 1 }
 0x185   :  { %v228_v4 = vadd.f32 %v227_v2, %v226_v1 }
 0x187   :  { %v231_v5 = vadd.f32 %v230_v3, %v228_v4 }
 0x189   :  { %232 = vst [vmem:[#allocation3] sm:$0x1] %v231_v5 }
 0x18a   :  { %311 = shalt.err (!%p308_p4)
}
 0x18b   :  { %s312_s12 = scalar_lea.hbm %s404_s4, 16 }
 0x18c   :  { %p313_p5 = scmp.ne.s32.totalorder %s404_s4, %s312_s12  ;;  %p316_p6 = scmp.lt.u32.totalorder %s312_s12, %s404_s4 }
 0x18e   :  { %p318_p7 = pnand %p316_p6, %p313_p5 }
 0x190   :  { %321 = shalt.err (!%p318_p7)
}
 0x191   :  { %242 = dma.vmem_to_hbm [thread:$0]  %s240_s7, 16, %s404_s4, [#allocation4]  }
 0x192   :  { %322 = dma.done.wait [#allocation4], 16  }
 0x193   :  { %323 = vsyncadd [#allocation4], 4294967280 }
 0x194   :  { %246 = vsyncpa [#allocation4], 1 }

</bundles_post_ra>
